<compile_context>
chip_gen: v7x
topology: tpu7x:2x2x1
jax: 0.10.0
libtpu: 0.0.40
codegen_flags: <defaults>
</compile_context>

<pallas_src>
import functools

import jax
import jax.numpy as jnp
from jax.experimental import pallas as pl
from jax.experimental.pallas import tpu as pltpu


# ----------------------------------------------------------------------------
# Fused Pallas kernel  (grid = (phase, batch_tile))
# ----------------------------------------------------------------------------
def tvae_fused_kernel(
    x_flat_ref, x0_ref, eps_ref,
    enc_w_ref, enc_b_ref,
    fc_h_w_ref, fc_h_b_ref,
    blk1_w_ref, blk1_b_ref,
    blk2_w_ref, blk2_b_ref,
    fc_p_w_ref, fc_p_b_ref,
    bn_ref,                                  # SMEM (2,): [gamma, beta]
    dec1_w_ref, dec1_b_ref,                  # merged (z_dim + F, dec_hidden)
    dec2_w_ref, dec2_b_ref,                  # merged+padded (dec_hidden, out_pad)
    zstats_out,                              # (tile_n, 2*z_dim)
    dec_out,                                 # (tile_n, out_pad)
    p_scratch,                               # VMEM (N, 2*z_dim), persists across grid
    colsum_ref, colsumsq_ref,                # VMEM (1, 2*z_dim) accumulators
    *, z_dim, n_blk, bn_eps, tile_n, total_n,
):
    f32 = jnp.float32
    bf16 = jnp.bfloat16
    phase = pl.program_id(0)
    t = pl.program_id(1)
    ntiles = total_n // tile_n
    row0 = pl.multiple_of(t * tile_n, tile_n)

    def mm(a, w):
        # bf16 operands (full MXU rate on v6e/v7x), f32 accumulation.
        return jnp.dot(a.astype(bf16), w, preferred_element_type=f32)

    # ---------------- phase 0: encoder -> fc_params, accumulate BN stats -----
    @pl.when(phase == 0)
    def _encode():
        @pl.when(t == 0)
        def _():
            colsum_ref[...] = jnp.zeros_like(colsum_ref)
            colsumsq_ref[...] = jnp.zeros_like(colsumsq_ref)

        x_flat = x_flat_ref[...]                                   # (tile, T*F)

        # sequence-encoder stand-in: mean-over-time folded into the matmul
        hidden = jnp.tanh(mm(x_flat, enc_w_ref[...]) + enc_b_ref[...])

        # InferenceNetwork: fc_h -> relu -> FCResBlock x2 -> fc_params
        e = jnp.maximum(mm(hidden, fc_h_w_ref[...]) + fc_h_b_ref[...], 0.0)

        def resblock(e_in, w_ref, b_ref):
            r = e_in
            for i in range(n_blk):                                 # static unroll
                r = mm(r, w_ref[i]) + b_ref[i]
                if i < n_blk - 1:
                    r = jnp.maximum(r, 0.0)
            return jnp.maximum(r + e_in, 0.0)

        e = resblock(e, blk1_w_ref, blk1_b_ref)
        e = resblock(e, blk2_w_ref, blk2_b_ref)
        pe = mm(e, fc_p_w_ref[...]) + fc_p_b_ref[...]              # (tile, 2Z)

        if ntiles == 1:
            p_scratch[...] = pe
        else:
            p_scratch[pl.ds(row0, tile_n), :] = pe
        colsum_ref[...] += jnp.sum(pe, axis=0, keepdims=True)
        colsumsq_ref[...] += jnp.sum(pe * pe, axis=0, keepdims=True)

    # ---------------- phase 1: BatchNorm (full-batch stats) -> z -> decoder ---
    @pl.when(phase == 1)
    def _decode():
        count = float(total_n * 2 * z_dim)
        mu = jnp.sum(colsum_ref[...]) * (1.0 / count)
        mean_sq = jnp.sum(colsumsq_ref[...]) * (1.0 / count)
        var = mean_sq - mu * mu                                    # biased (PyTorch norm)
        inv = jax.lax.rsqrt(var + bn_eps)
        gamma = bn_ref[0]
        beta = bn_ref[1]

        if ntiles == 1:
            pe = p_scratch[...]
        else:
            pe = p_scratch[pl.ds(row0, tile_n), :]
        pe = (pe - mu) * (inv * gamma) + beta                      # (tile, 2Z)
        zstats_out[...] = pe                                       # one wide store

        z_mean = pe[:, :z_dim]
        z_logvar = pe[:, z_dim:]
        z = z_mean + jnp.exp(0.5 * z_logvar) * eps_ref[...]        # reparameterize

        # decoder stand-in: single merged matmul on [z | x0]
        zx = jnp.concatenate([z, x0_ref[...]], axis=-1)            # (tile, Z+F)
        h = jnp.maximum(mm(zx, dec1_w_ref[...]) + dec1_b_ref[...], 0.0)
        dec_out[...] = mm(h, dec2_w_ref[...]) + dec2_b_ref[...]    # (tile, out_pad)


# ----------------------------------------------------------------------------
# Parameters
# ----------------------------------------------------------------------------
def init_params(key, *, n_features, encoder_dim, hidden_dim, n_hidden, z_dim,
                seq_len, dec_hidden):
    keys = jax.random.split(key, 10)
    s = 0.05
    bf16 = jnp.bfloat16

    def lin(k, i, o):
        kw, kb = jax.random.split(k)
        return (s * jax.random.normal(kw, (i, o), jnp.float32),
                s * jax.random.normal(kb, (1, o), jnp.float32))

    n_blk = n_hidden - 1
    out_w = (seq_len - 1) * n_features
    out_pad = ((2 * out_w + 127) // 128) * 128
    p = {}

    # seq_encoder stand-in: fold the 1/T mean into the weight -> one MXU contraction
    enc_w, p["enc_b"] = lin(keys[0], n_features, encoder_dim)
    p["enc_w_fold"] = (jnp.tile(enc_w, (seq_len, 1)) / float(seq_len)).astype(bf16)

    # InferenceNetwork
    fc_h_w, p["fc_h_b"] = lin(keys[1], encoder_dim, hidden_dim)
    p["fc_h_w"] = fc_h_w.astype(bf16)
    for name, k in (("blk1", keys[2]), ("blk2", keys[3])):
        ws, bs = [], []
        for kk in jax.random.split(k, n_blk):
            w, b = lin(kk, hidden_dim, hidden_dim)
            ws.append(w)
            bs.append(b)
        p[name + "_w"] = jnp.stack(ws).astype(bf16)                # (n_blk, H, H)
        p[name + "_b"] = jnp.stack(bs)                             # (n_blk, 1, H) f32
    fc_p_w, p["fc_params_b"] = lin(keys[4], hidden_dim, 2 * z_dim)
    p["fc_params_w"] = fc_p_w.astype(bf16)
    p["bn_scale_shift"] = jnp.array([1.0, 0.0], jnp.float32)       # 1-D SMEM: [gamma, beta]

    # decoder stand-in: merged first-layer weight, merged+padded head weight
    dec1_wz, p["dec1_b"] = lin(keys[5], z_dim, dec_hidden)
    dec1_wx, _ = lin(keys[6], n_features, dec_hidden)
    p["dec1_w"] = jnp.concatenate([dec1_wz, dec1_wx], axis=0).astype(bf16)
    dec2_wm, dec2_bm = lin(keys[7], dec_hidden, out_w)
    dec2_wl, dec2_bl = lin(keys[8], dec_hidden, out_w)
    dec2_w = jnp.concatenate([dec2_wm, dec2_wl], axis=1)           # (H, 2*out_w)
    dec2_b = jnp.concatenate([dec2_bm, dec2_bl], axis=1)
    pad = out_pad - 2 * out_w
    if pad:
        dec2_w = jnp.pad(dec2_w, ((0, 0), (0, pad)))
        dec2_b = jnp.pad(dec2_b, ((0, 0), (0, pad)))
    p["dec2_w"] = dec2_w.astype(bf16)                              # (H, out_pad)
    p["dec2_b"] = dec2_b                                           # (1, out_pad) f32
    return p


# ----------------------------------------------------------------------------
# Forward pass (single pallas_call, batch-tiled two-phase grid)
# ----------------------------------------------------------------------------
def _pick_tile_n(n, cap=256):
    if n <= 8:
        return n
    t = min(cap, n - n % 8)
    t -= t % 8
    while t > 8 and n % t:
        t -= 8
    return t if (t >= 8 and n % t == 0) else n


def tvae_forward(p, x, eps, *, z_dim, n_features, tile_n=None):
    """TVAE.forward for conv=False, onehot_state=False, no_initial_state=False."""
    n, seq_len, feat = x.shape
    x_flat = x.reshape(n, seq_len * feat)        # free row-major reshape
    x0 = x[:, 0, :]                              # (N, F) initial state for the decoder
    n_blk = p["blk1_w"].shape[0]
    out_w = (seq_len - 1) * feat
    out_pad = p["dec2_w"].shape[1]

    if tile_n is None:
        tile_n = _pick_tile_n(n)
    assert n % tile_n == 0, "batch must be divisible by tile_n"
    ntiles = n // tile_n

    kern = functools.partial(tvae_fused_kernel, z_dim=z_dim, n_blk=n_blk,
                             bn_eps=1e-3, tile_n=tile_n, total_n=n)

    def resident(shape):
        nd = len(shape)
        return pl.BlockSpec(shape, lambda ph, t, _nd=nd: (0,) * _nd)

    in_specs = [
        # x_flat: needed per tile in phase 0 only (parks on block 0 in phase 1)
        pl.BlockSpec((tile_n, seq_len * feat), lambda ph, t: ((1 - ph) * t, 0)),
        # x0, eps: needed per tile in phase 1 only (park on block 0 in phase 0)
        pl.BlockSpec((tile_n, feat), lambda ph, t: (ph * t, 0)),
        pl.BlockSpec((tile_n, z_dim), lambda ph, t: (ph * t, 0)),
        resident(p["enc_w_fold"].shape), resident(p["enc_b"].shape),
        resident(p["fc_h_w"].shape), resident(p["fc_h_b"].shape),
        resident(p["blk1_w"].shape), resident(p["blk1_b"].shape),
        resident(p["blk2_w"].shape), resident(p["blk2_b"].shape),
        resident(p["fc_params_w"].shape), resident(p["fc_params_b"].shape),
        pl.BlockSpec(memory_space=pltpu.MemorySpace.SMEM),          # bn (2,) gamma/beta
        resident(p["dec1_w"].shape), resident(p["dec1_b"].shape),
        resident(p["dec2_w"].shape), resident(p["dec2_b"].shape),
    ]
    # Outputs are written only in phase 1; phase-0 index maps park on block 0,
    # which phase 1 rewrites in VMEM before the first HBM writeback, so every
    # output block hits HBM exactly once (no masked/duplicate stores).
    out_specs = (
        pl.BlockSpec((tile_n, 2 * z_dim), lambda ph, t: (ph * t, 0)),
        pl.BlockSpec((tile_n, out_pad), lambda ph, t: (ph * t, 0)),
    )
    out_shape = (
        jax.ShapeDtypeStruct((n, 2 * z_dim), jnp.float32),
        jax.ShapeDtypeStruct((n, out_pad), jnp.float32),
    )
    scratch_shapes = [
        pltpu.VMEM((n, 2 * z_dim), jnp.float32),   # pre-BN activations (full batch)
        pltpu.VMEM((1, 2 * z_dim), jnp.float32),   # column sums
        pltpu.VMEM((1, 2 * z_dim), jnp.float32),   # column sums of squares
    ]

    zstats, dec = pl.pallas_call(
        kern,
        out_shape=out_shape,
        grid=(2, ntiles),                          # (phase, batch tile)
        in_specs=in_specs,
        out_specs=out_specs,
        scratch_shapes=scratch_shapes,
        compiler_params=pltpu.CompilerParams(
            # tile axis is NOT core-parallel: BN accumulators live in VMEM scratch
            dimension_semantics=("arbitrary", "arbitrary")),
    )(x_flat, x0, eps,
      p["enc_w_fold"], p["enc_b"],
      p["fc_h_w"], p["fc_h_b"],
      p["blk1_w"], p["blk1_b"],
      p["blk2_w"], p["blk2_b"],
      p["fc_params_w"], p["fc_params_b"],
      p["bn_scale_shift"],
      p["dec1_w"], p["dec1_b"],
      p["dec2_w"], p["dec2_b"])

    z_mean = zstats[:, :z_dim]
    z_logvar = zstats[:, z_dim:]
    x_mean = dec[:, :out_w].reshape(n, seq_len - 1, feat)
    x_logvar = dec[:, out_w:2 * out_w].reshape(n, seq_len - 1, feat)
    return (x[:, 1:], x_mean, x_logvar), (z_mean, z_logvar)


# ----------------------------------------------------------------------------
# Pure-JAX reference (identical math, incl. bf16 matmul operands) for checks
# ----------------------------------------------------------------------------
def reference_forward(p, x, eps, *, z_dim, n_features):
    n, seq_len, feat = x.shape
    x_flat = x.reshape(n, seq_len * feat)

    def mm(a, w):
        return jnp.dot(a.astype(jnp.bfloat16), w, preferred_element_type=jnp.float32)

    hidden = jnp.tanh(mm(x_flat, p["enc_w_fold"]) + p["enc_b"])
    e = jnp.maximum(mm(hidden, p["fc_h_w"]) + p["fc_h_b"], 0.0)

    def blk(e_in, w, b):
        r = e_in
        for i in range(w.shape[0]):
            r = mm(r, w[i]) + b[i]
            if i < w.shape[0] - 1:
                r = jnp.maximum(r, 0.0)
        return jnp.maximum(r + e_in, 0.0)

    e = blk(e, p["blk1_w"], p["blk1_b"])
    e = blk(e, p["blk2_w"], p["blk2_b"])
    pe = mm(e, p["fc_params_w"]) + p["fc_params_b"]
    mu = jnp.mean(pe)
    var = jnp.mean(pe * pe) - mu * mu
    pe = ((pe - mu) * (jax.lax.rsqrt(var + 1e-3) * p["bn_scale_shift"][0])
          + p["bn_scale_shift"][1])
    z_mean, z_logvar = pe[:, :z_dim], pe[:, z_dim:]
    z = z_mean + jnp.exp(0.5 * z_logvar) * eps
    zx = jnp.concatenate([z, x[:, 0, :]], axis=-1)
    h = jnp.maximum(mm(zx, p["dec1_w"]) + p["dec1_b"], 0.0)
    dec = mm(h, p["dec2_w"]) + p["dec2_b"]
    out_w = (seq_len - 1) * feat
    xm = dec[:, :out_w].reshape(n, seq_len - 1, feat)
    xl = dec[:, out_w:2 * out_w].reshape(n, seq_len - 1, feat)
    return (x[:, 1:], xm, xl), (z_mean, z_logvar)


# ----------------------------------------------------------------------------
if __name__ == "__main__":
    # Small config consistent with the module (N = batch_size * sample_size).
    batch_size, sample_size = 2, 8
    N = batch_size * sample_size
    T = 8                      # trajectory length  (T*F == 128 -> lane-dense input)
    n_features = 16
    encoder_dim = 32
    hidden_dim = 32            # hidden_dim_traj
    n_hidden = 3               # n_hidden_traj -> FCResBlock n = 2
    z_dim = 16
    dec_hidden = 32
    tile_n = 8                 # 2 batch tiles -> exercises the two-phase pipeline

    key = jax.random.PRNGKey(0)
    k_param, k_x, k_eps = jax.random.split(key, 3)

    params = init_params(k_param, n_features=n_features,
                         encoder_dim=encoder_dim, hidden_dim=hidden_dim,
                         n_hidden=n_hidden, z_dim=z_dim, seq_len=T,
                         dec_hidden=dec_hidden)

    x = jax.random.normal(k_x, (N, T, n_features), jnp.float32)
    eps = jax.random.normal(k_eps, (N, z_dim), jnp.float32)

    fwd = jax.jit(functools.partial(tvae_forward, z_dim=z_dim,
                                    n_features=n_features, tile_n=tile_n))
    (x_tgt, x_mean, x_logvar), (z_mean, z_logvar) = fwd(params, x, eps)
    jax.block_until_ready((x_tgt, x_mean, x_logvar, z_mean, z_logvar))

    # shape checks
    assert x_tgt.shape == (N, T - 1, n_features)
    assert x_mean.shape == (N, T - 1, n_features)
    assert x_logvar.shape == (N, T - 1, n_features)
    assert z_mean.shape == (N, z_dim)
    assert z_logvar.shape == (N, z_dim)
    assert jnp.all(jnp.isfinite(x_mean)) and jnp.all(jnp.isfinite(z_mean))

    # numeric check vs. pure-JAX reference of the same math
    (rx_tgt, rx_mean, rx_logvar), (rz_mean, rz_logvar) = reference_forward(
        params, x, eps, z_dim=z_dim, n_features=n_features)
    assert jnp.allclose(x_mean, rx_mean, atol=2e-3, rtol=2e-3)
    assert jnp.allclose(x_logvar, rx_logvar, atol=2e-3, rtol=2e-3)
    assert jnp.allclose(z_mean, rz_mean, atol=2e-3, rtol=2e-3)
    assert jnp.allclose(z_logvar, rz_logvar, atol=2e-3, rtol=2e-3)

    print("KERNEL_OK")
</pallas_src>

<mosaic_0001>
module attributes {stable_mosaic.version = 11 : i64} {
  func.func @tvae_fused_kernel(%arg0: i32, %arg1: i32, %arg2: memref<8x128xf32, #tpu.memory_space<vmem>>, %arg3: memref<8x16xf32, #tpu.memory_space<vmem>>, %arg4: memref<8x16xf32, #tpu.memory_space<vmem>>, %arg5: memref<128x32xbf16, #tpu.memory_space<vmem>>, %arg6: memref<1x32xf32, #tpu.memory_space<vmem>>, %arg7: memref<32x32xbf16, #tpu.memory_space<vmem>>, %arg8: memref<1x32xf32, #tpu.memory_space<vmem>>, %arg9: memref<2x32x32xbf16, #tpu.memory_space<vmem>>, %arg10: memref<2x1x32xf32, #tpu.memory_space<vmem>>, %arg11: memref<2x32x32xbf16, #tpu.memory_space<vmem>>, %arg12: memref<2x1x32xf32, #tpu.memory_space<vmem>>, %arg13: memref<32x32xbf16, #tpu.memory_space<vmem>>, %arg14: memref<1x32xf32, #tpu.memory_space<vmem>>, %arg15: memref<2xf32, #tpu.memory_space<smem>>, %arg16: memref<32x32xbf16, #tpu.memory_space<vmem>>, %arg17: memref<1x32xf32, #tpu.memory_space<vmem>>, %arg18: memref<32x256xbf16, #tpu.memory_space<vmem>>, %arg19: memref<1x256xf32, #tpu.memory_space<vmem>>, %arg20: memref<8x32xf32, #tpu.memory_space<vmem>>, %arg21: memref<8x256xf32, #tpu.memory_space<vmem>>, %arg22: memref<16x32xf32, #tpu.memory_space<vmem>>, %arg23: memref<1x32xf32, #tpu.memory_space<vmem>>, %arg24: memref<1x32xf32, #tpu.memory_space<vmem>>) attributes {dimension_semantics = [#tpu.dimension_semantics<arbitrary>, #tpu.dimension_semantics<arbitrary>], iteration_bounds = array<i64: 2, 2>, scalar_prefetch = 0 : i64, scratch_operands = 3 : i64, tpu.core_type = #tpu.core_type<tc>, window_params = [{transform_indices = @transform_0, window_bounds = array<i64: 8, 128>}, {transform_indices = @transform_1, window_bounds = array<i64: 8, 16>}, {transform_indices = @transform_2, window_bounds = array<i64: 8, 16>}, {pipeline_mode = #tpu.pipeline_mode<synchronous>, transform_indices = @transform_3, window_bounds = array<i64: 128, 32>}, {pipeline_mode = #tpu.pipeline_mode<synchronous>, transform_indices = @transform_4, window_bounds = array<i64: 1, 32>}, {pipeline_mode = #tpu.pipeline_mode<synchronous>, transform_indices = @transform_5, window_bounds = array<i64: 32, 32>}, {pipeline_mode = #tpu.pipeline_mode<synchronous>, transform_indices = @transform_6, window_bounds = array<i64: 1, 32>}, {pipeline_mode = #tpu.pipeline_mode<synchronous>, transform_indices = @transform_7, window_bounds = array<i64: 2, 32, 32>}, {pipeline_mode = #tpu.pipeline_mode<synchronous>, transform_indices = @transform_8, window_bounds = array<i64: 2, 1, 32>}, {pipeline_mode = #tpu.pipeline_mode<synchronous>, transform_indices = @transform_9, window_bounds = array<i64: 2, 32, 32>}, {pipeline_mode = #tpu.pipeline_mode<synchronous>, transform_indices = @transform_10, window_bounds = array<i64: 2, 1, 32>}, {pipeline_mode = #tpu.pipeline_mode<synchronous>, transform_indices = @transform_11, window_bounds = array<i64: 32, 32>}, {pipeline_mode = #tpu.pipeline_mode<synchronous>, transform_indices = @transform_12, window_bounds = array<i64: 1, 32>}, {transform_indices = @transform_13, window_bounds = array<i64: 2>}, {pipeline_mode = #tpu.pipeline_mode<synchronous>, transform_indices = @transform_14, window_bounds = array<i64: 32, 32>}, {pipeline_mode = #tpu.pipeline_mode<synchronous>, transform_indices = @transform_15, window_bounds = array<i64: 1, 32>}, {pipeline_mode = #tpu.pipeline_mode<synchronous>, transform_indices = @transform_16, window_bounds = array<i64: 32, 256>}, {pipeline_mode = #tpu.pipeline_mode<synchronous>, transform_indices = @transform_17, window_bounds = array<i64: 1, 256>}, {transform_indices = @transform_18, window_bounds = array<i64: 8, 32>}, {transform_indices = @transform_19, window_bounds = array<i64: 8, 256>}]} {
    %c8_i32 = arith.constant 8 : i32
    %0 = arith.muli %arg1, %c8_i32 : i32
    %1 = tpu.assume_multiple %0, 8 : i32
    %c0_i32 = arith.constant 0 : i32
    %2 = arith.cmpi eq, %arg0, %c0_i32 : i32
    %3 = arith.extui %2 : i1 to i32
    %c0_i32_0 = arith.constant 0 : i32
    %4 = arith.cmpi ne, %3, %c0_i32_0 : i32
    scf.if %4 {
      %c0_i32_2 = arith.constant 0 : i32
      %8 = arith.cmpi eq, %arg1, %c0_i32_2 : i32
      %9 = arith.extui %8 : i1 to i32
      %c0_i32_3 = arith.constant 0 : i32
      %10 = arith.cmpi ne, %9, %c0_i32_3 : i32
      scf.if %10 {
        %cst_62 = arith.constant 0.000000e+00 : f32
        %88 = vector.broadcast %cst_62 : f32 to vector<1x32xf32>
        %c0_63 = arith.constant 0 : index
        %c0_64 = arith.constant 0 : index
        %89 = vector.load %arg23[%c0_63, %c0_64] : memref<1x32xf32, #tpu.memory_space<vmem>>, vector<1x32xf32>
        tpu.vector_store %arg23[%c0_63, %c0_64], %88 {strides = array<i32>} : memref<1x32xf32, #tpu.memory_space<vmem>>, vector<1x32xf32>,
        %cst_65 = arith.constant 0.000000e+00 : f32
        %90 = vector.broadcast %cst_65 : f32 to vector<1x32xf32>
        %c0_66 = arith.constant 0 : index
        %c0_67 = arith.constant 0 : index
        %91 = vector.load %arg24[%c0_66, %c0_67] : memref<1x32xf32, #tpu.memory_space<vmem>>, vector<1x32xf32>
        tpu.vector_store %arg24[%c0_66, %c0_67], %90 {strides = array<i32>} : memref<1x32xf32, #tpu.memory_space<vmem>>, vector<1x32xf32>,
      } else {
      }
      %c0 = arith.constant 0 : index
      %c0_4 = arith.constant 0 : index
      %11 = vector.load %arg2[%c0, %c0_4] : memref<8x128xf32, #tpu.memory_space<vmem>>, vector<8x128xf32>
      %c0_5 = arith.constant 0 : index
      %c0_6 = arith.constant 0 : index
      %12 = vector.load %arg5[%c0_5, %c0_6] : memref<128x32xbf16, #tpu.memory_space<vmem>>, vector<128x32xbf16>
      %13 = arith.truncf %11 : vector<8x128xf32> to vector<8x128xbf16>
      %cst = arith.constant dense<0.000000e+00> : vector<8x32xf32>
      %14 = tpu.matmul %13, %12, %cst {dimension_numbers = #tpu.dot_dimension_numbers<[1], [0], [0], [1], [0, 0, 1, 1], [], []>} : vector<8x128xbf16>, vector<128x32xbf16>, vector<8x32xf32> -> vector<8x32xf32>
      %c0_7 = arith.constant 0 : index
      %c0_8 = arith.constant 0 : index
      %15 = vector.load %arg6[%c0_7, %c0_8] : memref<1x32xf32, #tpu.memory_space<vmem>>, vector<1x32xf32>
      %16 = vector.broadcast %15 : vector<1x32xf32> to vector<8x32xf32>
      %17 = arith.addf %14, %16 : vector<8x32xf32>
      %18 = math.tanh %17 : vector<8x32xf32>
      %c0_9 = arith.constant 0 : index
      %c0_10 = arith.constant 0 : index
      %19 = vector.load %arg7[%c0_9, %c0_10] : memref<32x32xbf16, #tpu.memory_space<vmem>>, vector<32x32xbf16>
      %20 = arith.truncf %18 : vector<8x32xf32> to vector<8x32xbf16>
      %cst_11 = arith.constant dense<0.000000e+00> : vector<8x32xf32>
      %21 = tpu.matmul %20, %19, %cst_11 {dimension_numbers = #tpu.dot_dimension_numbers<[1], [0], [0], [1], [0, 0, 1, 1], [], []>} : vector<8x32xbf16>, vector<32x32xbf16>, vector<8x32xf32> -> vector<8x32xf32>
      %c0_12 = arith.constant 0 : index
      %c0_13 = arith.constant 0 : index
      %22 = vector.load %arg8[%c0_12, %c0_13] : memref<1x32xf32, #tpu.memory_space<vmem>>, vector<1x32xf32>
      %23 = vector.broadcast %22 : vector<1x32xf32> to vector<8x32xf32>
      %24 = arith.addf %21, %23 : vector<8x32xf32>
      %cst_14 = arith.constant 0.000000e+00 : f32
      %25 = vector.broadcast %cst_14 : f32 to vector<8x32xf32>
      %26 = arith.maximumf %24, %25 : vector<8x32xf32>
      %c0_15 = arith.constant 0 : index
      %c0_16 = arith.constant 0 : index
      %c0_17 = arith.constant 0 : index
      %27 = vector.load %arg9[%c0_15, %c0_16, %c0_17] : memref<2x32x32xbf16, #tpu.memory_space<vmem>>, vector<1x32x32xbf16>
      %28 = vector.shape_cast %27 : vector<1x32x32xbf16> to vector<32x32xbf16>
      %29 = arith.truncf %26 : vector<8x32xf32> to vector<8x32xbf16>
      %cst_18 = arith.constant dense<0.000000e+00> : vector<8x32xf32>
      %30 = tpu.matmul %29, %28, %cst_18 {dimension_numbers = #tpu.dot_dimension_numbers<[1], [0], [0], [1], [0, 0, 1, 1], [], []>} : vector<8x32xbf16>, vector<32x32xbf16>, vector<8x32xf32> -> vector<8x32xf32>
      %c0_19 = arith.constant 0 : index
      %c0_20 = arith.constant 0 : index
      %c0_21 = arith.constant 0 : index
      %31 = vector.load %arg10[%c0_19, %c0_20, %c0_21] : memref<2x1x32xf32, #tpu.memory_space<vmem>>, vector<1x1x32xf32>
      %32 = vector.shape_cast %31 : vector<1x1x32xf32> to vector<1x32xf32>
      %33 = vector.broadcast %32 : vector<1x32xf32> to vector<8x32xf32>
      %34 = arith.addf %30, %33 : vector<8x32xf32>
      %cst_22 = arith.constant 0.000000e+00 : f32
      %35 = vector.broadcast %cst_22 : f32 to vector<8x32xf32>
      %36 = arith.maximumf %34, %35 : vector<8x32xf32>
      %c1 = arith.constant 1 : index
      %c0_23 = arith.constant 0 : index
      %c0_24 = arith.constant 0 : index
      %37 = vector.load %arg9[%c1, %c0_23, %c0_24] : memref<2x32x32xbf16, #tpu.memory_space<vmem>>, vector<1x32x32xbf16>
      %38 = vector.shape_cast %37 : vector<1x32x32xbf16> to vector<32x32xbf16>
      %39 = arith.truncf %36 : vector<8x32xf32> to vector<8x32xbf16>
      %cst_25 = arith.constant dense<0.000000e+00> : vector<8x32xf32>
      %40 = tpu.matmul %39, %38, %cst_25 {dimension_numbers = #tpu.dot_dimension_numbers<[1], [0], [0], [1], [0, 0, 1, 1], [], []>} : vector<8x32xbf16>, vector<32x32xbf16>, vector<8x32xf32> -> vector<8x32xf32>
      %c1_26 = arith.constant 1 : index
      %c0_27 = arith.constant 0 : index
      %c0_28 = arith.constant 0 : index
      %41 = vector.load %arg10[%c1_26, %c0_27, %c0_28] : memref<2x1x32xf32, #tpu.memory_space<vmem>>, vector<1x1x32xf32>
      %42 = vector.shape_cast %41 : vector<1x1x32xf32> to vector<1x32xf32>
      %43 = vector.broadcast %42 : vector<1x32xf32> to vector<8x32xf32>
      %44 = arith.addf %40, %43 : vector<8x32xf32>
      %45 = arith.addf %44, %26 : vector<8x32xf32>
      %cst_29 = arith.constant 0.000000e+00 : f32
      %46 = vector.broadcast %cst_29 : f32 to vector<8x32xf32>
      %47 = arith.maximumf %45, %46 : vector<8x32xf32>
      %c0_30 = arith.constant 0 : index
      %c0_31 = arith.constant 0 : index
      %c0_32 = arith.constant 0 : index
      %48 = vector.load %arg11[%c0_30, %c0_31, %c0_32] : memref<2x32x32xbf16, #tpu.memory_space<vmem>>, vector<1x32x32xbf16>
      %49 = vector.shape_cast %48 : vector<1x32x32xbf16> to vector<32x32xbf16>
      %50 = arith.truncf %47 : vector<8x32xf32> to vector<8x32xbf16>
      %cst_33 = arith.constant dense<0.000000e+00> : vector<8x32xf32>
      %51 = tpu.matmul %50, %49, %cst_33 {dimension_numbers = #tpu.dot_dimension_numbers<[1], [0], [0], [1], [0, 0, 1, 1], [], []>} : vector<8x32xbf16>, vector<32x32xbf16>, vector<8x32xf32> -> vector<8x32xf32>
      %c0_34 = arith.constant 0 : index
      %c0_35 = arith.constant 0 : index
      %c0_36 = arith.constant 0 : index
      %52 = vector.load %arg12[%c0_34, %c0_35, %c0_36] : memref<2x1x32xf32, #tpu.memory_space<vmem>>, vector<1x1x32xf32>
      %53 = vector.shape_cast %52 : vector<1x1x32xf32> to vector<1x32xf32>
      %54 = vector.broadcast %53 : vector<1x32xf32> to vector<8x32xf32>
      %55 = arith.addf %51, %54 : vector<8x32xf32>
      %cst_37 = arith.constant 0.000000e+00 : f32
      %56 = vector.broadcast %cst_37 : f32 to vector<8x32xf32>
      %57 = arith.maximumf %55, %56 : vector<8x32xf32>
      %c1_38 = arith.constant 1 : index
      %c0_39 = arith.constant 0 : index
      %c0_40 = arith.constant 0 : index
      %58 = vector.load %arg11[%c1_38, %c0_39, %c0_40] : memref<2x32x32xbf16, #tpu.memory_space<vmem>>, vector<1x32x32xbf16>
      %59 = vector.shape_cast %58 : vector<1x32x32xbf16> to vector<32x32xbf16>
      %60 = arith.truncf %57 : vector<8x32xf32> to vector<8x32xbf16>
      %cst_41 = arith.constant dense<0.000000e+00> : vector<8x32xf32>
      %61 = tpu.matmul %60, %59, %cst_41 {dimension_numbers = #tpu.dot_dimension_numbers<[1], [0], [0], [1], [0, 0, 1, 1], [], []>} : vector<8x32xbf16>, vector<32x32xbf16>, vector<8x32xf32> -> vector<8x32xf32>
      %c1_42 = arith.constant 1 : index
      %c0_43 = arith.constant 0 : index
      %c0_44 = arith.constant 0 : index
      %62 = vector.load %arg12[%c1_42, %c0_43, %c0_44] : memref<2x1x32xf32, #tpu.memory_space<vmem>>, vector<1x1x32xf32>
      %63 = vector.shape_cast %62 : vector<1x1x32xf32> to vector<1x32xf32>
      %64 = vector.broadcast %63 : vector<1x32xf32> to vector<8x32xf32>
      %65 = arith.addf %61, %64 : vector<8x32xf32>
      %66 = arith.addf %65, %47 : vector<8x32xf32>
      %cst_45 = arith.constant 0.000000e+00 : f32
      %67 = vector.broadcast %cst_45 : f32 to vector<8x32xf32>
      %68 = arith.maximumf %66, %67 : vector<8x32xf32>
      %c0_46 = arith.constant 0 : index
      %c0_47 = arith.constant 0 : index
      %69 = vector.load %arg13[%c0_46, %c0_47] : memref<32x32xbf16, #tpu.memory_space<vmem>>, vector<32x32xbf16>
      %70 = arith.truncf %68 : vector<8x32xf32> to vector<8x32xbf16>
      %cst_48 = arith.constant dense<0.000000e+00> : vector<8x32xf32>
      %71 = tpu.matmul %70, %69, %cst_48 {dimension_numbers = #tpu.dot_dimension_numbers<[1], [0], [0], [1], [0, 0, 1, 1], [], []>} : vector<8x32xbf16>, vector<32x32xbf16>, vector<8x32xf32> -> vector<8x32xf32>
      %c0_49 = arith.constant 0 : index
      %c0_50 = arith.constant 0 : index
      %72 = vector.load %arg14[%c0_49, %c0_50] : memref<1x32xf32, #tpu.memory_space<vmem>>, vector<1x32xf32>
      %73 = vector.broadcast %72 : vector<1x32xf32> to vector<8x32xf32>
      %74 = arith.addf %71, %73 : vector<8x32xf32>
      %75 = arith.index_cast %1 : i32 to index
      %c0_51 = arith.constant 0 : index
      %76 = vector.load %arg22[%75, %c0_51] : memref<16x32xf32, #tpu.memory_space<vmem>>, vector<8x32xf32>
      tpu.vector_store %arg22[%75, %c0_51], %74 {strides = array<i32>} : memref<16x32xf32, #tpu.memory_space<vmem>>, vector<8x32xf32>,
      %c0_52 = arith.constant 0 : index
      %c0_53 = arith.constant 0 : index
      %77 = vector.load %arg23[%c0_52, %c0_53] : memref<1x32xf32, #tpu.memory_space<vmem>>, vector<1x32xf32>
      %cst_54 = arith.constant dense<0.000000e+00> : vector<32xf32>
      %78 = vector.multi_reduction <add>, %74, %cst_54 [0] : vector<8x32xf32> to vector<32xf32>
      %79 = vector.shape_cast %78 : vector<32xf32> to vector<1x32xf32>
      %80 = arith.addf %77, %79 : vector<1x32xf32>
      %c0_55 = arith.constant 0 : index
      %c0_56 = arith.constant 0 : index
      %81 = vector.load %arg23[%c0_55, %c0_56] : memref<1x32xf32, #tpu.memory_space<vmem>>, vector<1x32xf32>
      tpu.vector_store %arg23[%c0_55, %c0_56], %80 {strides = array<i32>} : memref<1x32xf32, #tpu.memory_space<vmem>>, vector<1x32xf32>,
      %c0_57 = arith.constant 0 : index
      %c0_58 = arith.constant 0 : index
      %82 = vector.load %arg24[%c0_57, %c0_58] : memref<1x32xf32, #tpu.memory_space<vmem>>, vector<1x32xf32>
      %83 = arith.mulf %74, %74 : vector<8x32xf32>
      %cst_59 = arith.constant dense<0.000000e+00> : vector<32xf32>
      %84 = vector.multi_reduction <add>, %83, %cst_59 [0] : vector<8x32xf32> to vector<32xf32>
      %85 = vector.shape_cast %84 : vector<32xf32> to vector<1x32xf32>
      %86 = arith.addf %82, %85 : vector<1x32xf32>
      %c0_60 = arith.constant 0 : index
      %c0_61 = arith.constant 0 : index
      %87 = vector.load %arg24[%c0_60, %c0_61] : memref<1x32xf32, #tpu.memory_space<vmem>>, vector<1x32xf32>
      tpu.vector_store %arg24[%c0_60, %c0_61], %86 {strides = array<i32>} : memref<1x32xf32, #tpu.memory_space<vmem>>, vector<1x32xf32>,
    } else {
    }
    %c1_i32 = arith.constant 1 : i32
    %5 = arith.cmpi eq, %arg0, %c1_i32 : i32
    %6 = arith.extui %5 : i1 to i32
    %c0_i32_1 = arith.constant 0 : i32
    %7 = arith.cmpi ne, %6, %c0_i32_1 : i32
    scf.if %7 {
      %c0 = arith.constant 0 : index
      %c0_2 = arith.constant 0 : index
      %8 = vector.load %arg23[%c0, %c0_2] : memref<1x32xf32, #tpu.memory_space<vmem>>, vector<1x32xf32>
      %9 = vector.shape_cast %8 : vector<1x32xf32> to vector<1x1x32xf32>
      %cst = arith.constant dense<0.000000e+00> : vector<1xf32>
      %10 = vector.multi_reduction <add>, %9, %cst [1, 2] : vector<1x1x32xf32> to vector<1xf32>
      %11 = vector.shape_cast %10 : vector<1xf32> to vector<1x1x1xf32>
      %12 = vector.extract %11[0, 0, 0] : f32 from vector<1x1x1xf32>
      %cst_3 = arith.constant 0.001953125 : f32
      %13 = arith.mulf %12, %cst_3 : f32
      %c0_4 = arith.constant 0 : index
      %c0_5 = arith.constant 0 : index
      %14 = vector.load %arg24[%c0_4, %c0_5] : memref<1x32xf32, #tpu.memory_space<vmem>>, vector<1x32xf32>
      %15 = vector.shape_cast %14 : vector<1x32xf32> to vector<1x1x32xf32>
      %cst_6 = arith.constant dense<0.000000e+00> : vector<1xf32>
      %16 = vector.multi_reduction <add>, %15, %cst_6 [1, 2] : vector<1x1x32xf32> to vector<1xf32>
      %17 = vector.shape_cast %16 : vector<1xf32> to vector<1x1x1xf32>
      %18 = vector.extract %17[0, 0, 0] : f32 from vector<1x1x1xf32>
      %cst_7 = arith.constant 0.001953125 : f32
      %19 = arith.mulf %18, %cst_7 : f32
      %20 = arith.mulf %13, %13 : f32
      %21 = arith.subf %19, %20 : f32
      %cst_8 = arith.constant 1.000000e-03 : f32
      %22 = arith.addf %21, %cst_8 : f32
      %23 = math.rsqrt %22 : f32
      %c0_9 = arith.constant 0 : index
      %24 = memref.load %arg15[%c0_9] : memref<2xf32, #tpu.memory_space<smem>>
      %c1 = arith.constant 1 : index
      %25 = memref.load %arg15[%c1] : memref<2xf32, #tpu.memory_space<smem>>
      %26 = arith.index_cast %1 : i32 to index
      %c0_10 = arith.constant 0 : index
      %27 = vector.load %arg22[%26, %c0_10] : memref<16x32xf32, #tpu.memory_space<vmem>>, vector<8x32xf32>
      %28 = vector.broadcast %13 : f32 to vector<8x32xf32>
      %29 = arith.subf %27, %28 : vector<8x32xf32>
      %30 = arith.mulf %23, %24 : f32
      %31 = vector.broadcast %30 : f32 to vector<8x32xf32>
      %32 = arith.mulf %29, %31 : vector<8x32xf32>
      %33 = vector.broadcast %25 : f32 to vector<8x32xf32>
      %34 = arith.addf %32, %33 : vector<8x32xf32>
      %c0_11 = arith.constant 0 : index
      %c0_12 = arith.constant 0 : index
      %35 = vector.load %arg20[%c0_11, %c0_12] : memref<8x32xf32, #tpu.memory_space<vmem>>, vector<8x32xf32>
      tpu.vector_store %arg20[%c0_11, %c0_12], %34 {strides = array<i32>} : memref<8x32xf32, #tpu.memory_space<vmem>>, vector<8x32xf32>,
      %36 = vector.extract_strided_slice %34 {offsets = [0, 0], sizes = [8, 16], strides = [1, 1]} : vector<8x32xf32> to vector<8x16xf32>
      %37 = vector.extract_strided_slice %34 {offsets = [0, 16], sizes = [8, 16], strides = [1, 1]} : vector<8x32xf32> to vector<8x16xf32>
      %cst_13 = arith.constant 5.000000e-01 : f32
      %38 = vector.broadcast %cst_13 : f32 to vector<8x16xf32>
      %39 = arith.mulf %38, %37 : vector<8x16xf32>
      %40 = math.exp %39 : vector<8x16xf32>
      %c0_14 = arith.constant 0 : index
      %c0_15 = arith.constant 0 : index
      %41 = vector.load %arg4[%c0_14, %c0_15] : memref<8x16xf32, #tpu.memory_space<vmem>>, vector<8x16xf32>
      %42 = arith.mulf %40, %41 : vector<8x16xf32>
      %43 = arith.addf %36, %42 : vector<8x16xf32>
      %c0_16 = arith.constant 0 : index
      %c0_17 = arith.constant 0 : index
      %44 = vector.load %arg3[%c0_16, %c0_17] : memref<8x16xf32, #tpu.memory_space<vmem>>, vector<8x16xf32>
      %45 = tpu.concatenate %43, %44 in 1 : vector<8x16xf32>, vector<8x16xf32> -> vector<8x32xf32>
      %c0_18 = arith.constant 0 : index
      %c0_19 = arith.constant 0 : index
      %46 = vector.load %arg16[%c0_18, %c0_19] : memref<32x32xbf16, #tpu.memory_space<vmem>>, vector<32x32xbf16>
      %47 = arith.truncf %45 : vector<8x32xf32> to vector<8x32xbf16>
      %cst_20 = arith.constant dense<0.000000e+00> : vector<8x32xf32>
      %48 = tpu.matmul %47, %46, %cst_20 {dimension_numbers = #tpu.dot_dimension_numbers<[1], [0], [0], [1], [0, 0, 1, 1], [], []>} : vector<8x32xbf16>, vector<32x32xbf16>, vector<8x32xf32> -> vector<8x32xf32>
      %c0_21 = arith.constant 0 : index
      %c0_22 = arith.constant 0 : index
      %49 = vector.load %arg17[%c0_21, %c0_22] : memref<1x32xf32, #tpu.memory_space<vmem>>, vector<1x32xf32>
      %50 = vector.broadcast %49 : vector<1x32xf32> to vector<8x32xf32>
      %51 = arith.addf %48, %50 : vector<8x32xf32>
      %cst_23 = arith.constant 0.000000e+00 : f32
      %52 = vector.broadcast %cst_23 : f32 to vector<8x32xf32>
      %53 = arith.maximumf %51, %52 : vector<8x32xf32>
      %c0_24 = arith.constant 0 : index
      %c0_25 = arith.constant 0 : index
      %54 = vector.load %arg18[%c0_24, %c0_25] : memref<32x256xbf16, #tpu.memory_space<vmem>>, vector<32x256xbf16>
      %55 = arith.truncf %53 : vector<8x32xf32> to vector<8x32xbf16>
      %cst_26 = arith.constant dense<0.000000e+00> : vector<8x256xf32>
      %56 = tpu.matmul %55, %54, %cst_26 {dimension_numbers = #tpu.dot_dimension_numbers<[1], [0], [0], [1], [0, 0, 1, 1], [], []>} : vector<8x32xbf16>, vector<32x256xbf16>, vector<8x256xf32> -> vector<8x256xf32>
      %c0_27 = arith.constant 0 : index
      %c0_28 = arith.constant 0 : index
      %57 = vector.load %arg19[%c0_27, %c0_28] : memref<1x256xf32, #tpu.memory_space<vmem>>, vector<1x256xf32>
      %58 = vector.broadcast %57 : vector<1x256xf32> to vector<8x256xf32>
      %59 = arith.addf %56, %58 : vector<8x256xf32>
      %c0_29 = arith.constant 0 : index
      %c0_30 = arith.constant 0 : index
      %60 = vector.load %arg21[%c0_29, %c0_30] : memref<8x256xf32, #tpu.memory_space<vmem>>, vector<8x256xf32>
      tpu.vector_store %arg21[%c0_29, %c0_30], %59 {strides = array<i32>} : memref<8x256xf32, #tpu.memory_space<vmem>>, vector<8x256xf32>,
    } else {
    }
    return
  }
  func.func @transform_0(%arg0: i32, %arg1: i32) -> (i32, i32) {
    %c1_i32 = arith.constant 1 : i32
    %0 = arith.subi %c1_i32, %arg0 : i32
    %1 = arith.muli %0, %arg1 : i32
    %c0_i32 = arith.constant 0 : i32
    %c0_i32_0 = arith.constant 0 : i32
    return %1, %c0_i32 : i32, i32
  }
  func.func @transform_1(%arg0: i32, %arg1: i32) -> (i32, i32) {
    %0 = arith.muli %arg0, %arg1 : i32
    %c0_i32 = arith.constant 0 : i32
    %c0_i32_0 = arith.constant 0 : i32
    return %0, %c0_i32 : i32, i32
  }
  func.func @transform_2(%arg0: i32, %arg1: i32) -> (i32, i32) {
    %0 = arith.muli %arg0, %arg1 : i32
    %c0_i32 = arith.constant 0 : i32
    %c0_i32_0 = arith.constant 0 : i32
    return %0, %c0_i32 : i32, i32
  }
  func.func @transform_3(%arg0: i32, %arg1: i32) -> (i32, i32) {
    %c0_i32 = arith.constant 0 : i32
    %c0_i32_0 = arith.constant 0 : i32
    %c0_i32_1 = arith.constant 0 : i32
    return %c0_i32, %c0_i32_0 : i32, i32
  }
  func.func @transform_4(%arg0: i32, %arg1: i32) -> (i32, i32) {
    %c0_i32 = arith.constant 0 : i32
    %c0_i32_0 = arith.constant 0 : i32
    %c0_i32_1 = arith.constant 0 : i32
    return %c0_i32, %c0_i32_0 : i32, i32
  }
  func.func @transform_5(%arg0: i32, %arg1: i32) -> (i32, i32) {
    %c0_i32 = arith.constant 0 : i32
    %c0_i32_0 = arith.constant 0 : i32
    %c0_i32_1 = arith.constant 0 : i32
    return %c0_i32, %c0_i32_0 : i32, i32
  }
  func.func @transform_6(%arg0: i32, %arg1: i32) -> (i32, i32) {
    %c0_i32 = arith.constant 0 : i32
    %c0_i32_0 = arith.constant 0 : i32
    %c0_i32_1 = arith.constant 0 : i32
    return %c0_i32, %c0_i32_0 : i32, i32
  }
  func.func @transform_7(%arg0: i32, %arg1: i32) -> (i32, i32, i32) {
    %c0_i32 = arith.constant 0 : i32
    %c0_i32_0 = arith.constant 0 : i32
    %c0_i32_1 = arith.constant 0 : i32
    %c0_i32_2 = arith.constant 0 : i32
    return %c0_i32, %c0_i32_0, %c0_i32_1 : i32, i32, i32
  }
  func.func @transform_8(%arg0: i32, %arg1: i32) -> (i32, i32, i32) {
    %c0_i32 = arith.constant 0 : i32
    %c0_i32_0 = arith.constant 0 : i32
    %c0_i32_1 = arith.constant 0 : i32
    %c0_i32_2 = arith.constant 0 : i32
    return %c0_i32, %c0_i32_0, %c0_i32_1 : i32, i32, i32
  }
  func.func @transform_9(%arg0: i32, %arg1: i32) -> (i32, i32, i32) {
    %c0_i32 = arith.constant 0 : i32
    %c0_i32_0 = arith.constant 0 : i32
    %c0_i32_1 = arith.constant 0 : i32
    %c0_i32_2 = arith.constant 0 : i32
    return %c0_i32, %c0_i32_0, %c0_i32_1 : i32, i32, i32
  }
  func.func @transform_10(%arg0: i32, %arg1: i32) -> (i32, i32, i32) {
    %c0_i32 = arith.constant 0 : i32
    %c0_i32_0 = arith.constant 0 : i32
    %c0_i32_1 = arith.constant 0 : i32
    %c0_i32_2 = arith.constant 0 : i32
    return %c0_i32, %c0_i32_0, %c0_i32_1 : i32, i32, i32
  }
  func.func @transform_11(%arg0: i32, %arg1: i32) -> (i32, i32) {
    %c0_i32 = arith.constant 0 : i32
    %c0_i32_0 = arith.constant 0 : i32
    %c0_i32_1 = arith.constant 0 : i32
    return %c0_i32, %c0_i32_0 : i32, i32
  }
  func.func @transform_12(%arg0: i32, %arg1: i32) -> (i32, i32) {
    %c0_i32 = arith.constant 0 : i32
    %c0_i32_0 = arith.constant 0 : i32
    %c0_i32_1 = arith.constant 0 : i32
    return %c0_i32, %c0_i32_0 : i32, i32
  }
  func.func @transform_13(%arg0: i32, %arg1: i32) -> i32 {
    %c0_i32 = arith.constant 0 : i32
    %c0_i32_0 = arith.constant 0 : i32
    return %c0_i32 : i32
  }
  func.func @transform_14(%arg0: i32, %arg1: i32) -> (i32, i32) {
    %c0_i32 = arith.constant 0 : i32
    %c0_i32_0 = arith.constant 0 : i32
    %c0_i32_1 = arith.constant 0 : i32
    return %c0_i32, %c0_i32_0 : i32, i32
  }
  func.func @transform_15(%arg0: i32, %arg1: i32) -> (i32, i32) {
    %c0_i32 = arith.constant 0 : i32
    %c0_i32_0 = arith.constant 0 : i32
    %c0_i32_1 = arith.constant 0 : i32
    return %c0_i32, %c0_i32_0 : i32, i32
  }
  func.func @transform_16(%arg0: i32, %arg1: i32) -> (i32, i32) {
    %c0_i32 = arith.constant 0 : i32
    %c0_i32_0 = arith.constant 0 : i32
    %c0_i32_1 = arith.constant 0 : i32
    return %c0_i32, %c0_i32_0 : i32, i32
  }
  func.func @transform_17(%arg0: i32, %arg1: i32) -> (i32, i32) {
    %c0_i32 = arith.constant 0 : i32
    %c0_i32_0 = arith.constant 0 : i32
    %c0_i32_1 = arith.constant 0 : i32
    return %c0_i32, %c0_i32_0 : i32, i32
  }
  func.func @transform_18(%arg0: i32, %arg1: i32) -> (i32, i32) {
    %0 = arith.muli %arg0, %arg1 : i32
    %c0_i32 = arith.constant 0 : i32
    %c0_i32_0 = arith.constant 0 : i32
    return %0, %c0_i32 : i32, i32
  }
  func.func @transform_19(%arg0: i32, %arg1: i32) -> (i32, i32) {
    %0 = arith.muli %arg0, %arg1 : i32
    %c0_i32 = arith.constant 0 : i32
    %c0_i32_0 = arith.constant 0 : i32
    return %0, %c0_i32 : i32, i32
  }
}

</mosaic_0001>

<bundles_post_ra>
// kernel: tvae_forward.1
= control target key start
LH: loop header
LB: loop body
LE: loop exit
PB: predicated region body
PF: predicated region fallthrough
CT: control target
= control target key end

     0   :  { %s2360_s0 = inlined_call_operand.vmem [shape: f32[16,128], index: 0, kind: input, shape index: {}]   ;;  %s2361_s1 = inlined_call_operand.vmem [shape: f32[16,16], index: 1, kind: input, shape index: {}]   ;;  %s2362_s2 = inlined_call_operand.vmem [shape: f32[16,16], index: 2, kind: input, shape index: {}]   ;;  %s2363_s3 = inlined_call_operand.vmem [shape: bf16[128,32], index: 3, kind: input, shape index: {}]   ;;  %s2364_s4 = inlined_call_operand.vmem [shape: f32[1,32], index: 4, kind: input, shape index: {}]   ;;  %s2365_s5 = inlined_call_operand.vmem [shape: bf16[32,32], index: 5, kind: input, shape index: {}]   ;;  %s2366_s6 = inlined_call_operand.vmem [shape: f32[1,32], index: 6, kind: input, shape index: {}]   ;;  %s2367_s7 = inlined_call_operand.vmem [shape: bf16[2,32,32], index: 7, kind: input, shape index: {}]   ;;  %s2368_s8 = inlined_call_operand.vmem [shape: f32[2,1,32], index: 8, kind: input, shape index: {}]   ;;  %s2369_s9 = inlined_call_operand.vmem [shape: bf16[2,32,32], index: 9, kind: input, shape index: {}]   ;;  %s2370_s10 = inlined_call_operand.vmem [shape: f32[2,1,32], index: 10, kind: input, shape index: {}]   ;;  %s2371_s11 = inlined_call_operand.vmem [shape: bf16[32,32], index: 11, kind: input, shape index: {}]   ;;  %s2372_s12 = inlined_call_operand.vmem [shape: f32[1,32], index: 12, kind: input, shape index: {}]   ;;  %s2373_s13 = inlined_call_operand.vmem [shape: f32[2], index: 13, kind: input, shape index: {}]   ;;  %s2374_s14 = inlined_call_operand.vmem [shape: bf16[32,32], index: 14, kind: input, shape index: {}]   ;;  %s2375_s15 = inlined_call_operand.vmem [shape: f32[1,32], index: 15, kind: input, shape index: {}]   ;;  %s2376_s16 = inlined_call_operand.vmem [shape: bf16[32,256], index: 16, kind: input, shape index: {}]   ;;  %s2377_s17 = inlined_call_operand.vmem [shape: f32[1,256], index: 17, kind: input, shape index: {}]   ;;  %s2378_s18 = inlined_call_operand.vmem [shape: f32[16,32], index: 18, kind: output, shape index: {0}]   ;;  %s2379_s19 = inlined_call_operand.vmem [shape: f32[16,256], index: 19, kind: output, shape index: {1}]  }
   0x1   :  { %2388 = sst [smem:[#allocation13_spill]] %s2360_s0 }
   0x2   :  { %2389 = sst [smem:[#allocation14_spill]] %s2361_s1 }
   0x3   :  { %2390 = sst [smem:[#allocation15_spill]] %s2362_s2 }
   0x4   :  { %2391 = sst [smem:[#allocation16_spill]] %s2363_s3 }
   0x5   :  { %2392 = sst [smem:[#allocation17_spill]] %s2370_s10 }
   0x6   :  { %2393 = sst [smem:[#allocation18_spill]] %s2371_s11 }
   0x7   :  { %2394 = sst [smem:[#allocation19_spill]] %s2372_s12 }
   0x8   :  { %2395 = sst [smem:[#allocation20_spill]] %s2373_s13 }
   0x9   :  { %2396 = sst [smem:[#allocation21_spill]] %s2374_s14 }
   0xa   :  { %2397 = sst [smem:[#allocation22_spill]] %s2375_s15 }
   0xb   :  { %2398 = sst [smem:[#allocation23_spill]] %s2376_s16 }
   0xc   :  { %2399 = sst [smem:[#allocation24_spill]] %s2377_s17 }
   0xd   :  { %25 = vsyncpa [#allocation6], 0  ;;  %s2084_s0 = smov 0   ;;  %s2086_s30 = smov 0  }
   0xe   :  { %s2088_s20 = smov 0   ;;  %s2090_s21 = smov 0  }
   0xf   :  { %s2092_s1 = smov 0  }
  0x10 LB: > { %2400 = sst [smem:[#allocation8_spill]] %s1965_s20  ;;  %s1638_s22 = sadd.s32 4294967295, %s1973_s1   ;;  %s1973_s1 = sphi %s2092_s1, %s31_s1   ;;  %s1969_s21 = sphi %s2090_s21, %s2428_s21   ;;  %s1965_s20 = sphi %s2088_s20, %s2427_s20   ;;  %s1961_s30 = sphi %s2086_s30, %s2426_s30   ;;  %s1957_s0 = sphi %s2084_s0, %s2425_s0  }
  0x11   : > { %2401 = sst [smem:[#allocation9_spill]] %s1969_s21  ;;  %s40_s2 = sadd.s32 1, %s1965_s20 }
  0x12   : > { %2402 = sst [smem:[#allocation10_spill]] %s1973_s1  ;;  %p41_p0 = scmp.ge.s32.totalorder %s40_s2, 2 }
  0x13   : > { %s43_s23 = sadd.s32 1, %s1969_s21  ;;  %p1640_p1 = scmp.ge.s32.totalorder %s1973_s1, 1 }
  0x14   : > { %p505_p2 = scmp.lt.s32.totalorder %s1973_s1, 5  ;;  %s2430_s2 = smov (%p41_p0, %s40_s2), 0 }
  0x15   : > { %2403 = sst [smem:[#allocation11_spill]] %s2430_s2  ;;  %s2432_s23 = smov (!%p41_p0, %s43_s23), %s1969_s21 }
  0x16   : > { %p2117_p3 = pnand %p1640_p1, %p505_p2  ;;  %p45_p4 = scmp.ge.s32.totalorder %s2432_s23, 2 }
  0x17   : > { %p2121_p5 = scmp.eq.s32.totalorder %s1638_s22, 0  ;;  %s2406_s13 = sld [smem:[#allocation20_spill]] }
  0x18   : > { %p1827_p6 = pneg %p2117_p3  ;;  %s2434_s23 = smov (%p45_p4, %s2432_s23), 0 }
  0x19   : > { %2407 = sst [smem:[#allocation12_spill]] %s2434_s23 }
  0x1a   : > { %p1828_p7 = pnand %p2121_p5, %p1827_p6 }
  0x1c   : > { %p1918_p9 = pneg %p1828_p7 }
  0x1d   : > { %s548_s27 = sshll.u32 %s2406_s13, 4  ;;  %s549_s27 = int_to_ptr.vmem [resolvable:$true] %s548_s27 }
  0x1e   : > { %s1916_s28 = scalar_lea.vmem %s549_s27, 16  ;;  %p1924_p12 = scmp.lt.s32.totalorder %s549_s27, %s549_s27 }
  0x1f   : > { %p1917_p8 = scmp.ne.s32.totalorder %s549_s27, %s1916_s28  ;;  %p1925_p13 = scmp.lt.s32.totalorder %s1916_s28, %s1916_s28 }
  0x21   : > { %p1919_p10 = pnand %p1918_p9, %p1917_p8  ;;  %p1926_p0 = por %p1925_p13, %p1924_p12 }
  0x23   : > { %p1920_p11 = pneg %p1919_p10 }
  0x25   : > { %p1927_p1 = pnand %p1926_p0, %p1920_p11 }
  0x27   : > { %1930 = shalt.err (!%p1927_p1)
}
  0x28   : > { %s1975_s29 = smov [#allocation5]   ;;  %602 = sbr.rel (%p2117_p3) target bundleno = 2524 (0x9dc), region = 92 }
  0x29   : > { %1830 = dma.vmem_to_smem (!%p1828_p7), %s549_s27, 16, %s1975_s29, [#allocation6]  }
  0x2f   : > { %1952 = dma.done.wait (%p2121_p5), [#allocation6], 16  }
  0x30   : > { %1954 = vsyncadd (%p2121_p5), [#allocation6], 4294967280 }
  0x31   : > { %608 = sfence }
  0x32   : > { %s676_s22 = ssub.s32 1, %s1961_s30  ;;  %s684_s3 = smul.u32 %s1957_s0, %s1961_s30 }
  0x33   : > { %s677_s26 = smul.u32 %s1957_s0, %s676_s22  ;;  %s2408_s23 = sld [smem:[#allocation14_spill]] }
  0x34   : > { %p685_p2 = scmp.lt.s32.totalorder %s684_s3, 1  ;;  %s2409_s1 = sld [smem:[#allocation13_spill]] }
  0x35   : > { %p678_p4 = scmp.lt.s32.totalorder %s677_s26, 1  ;;  %s2410_s15 = sld [smem:[#allocation15_spill]] }
  0x36   : > { %s2436_s3 = smov (!%p685_p2, %s684_s3), 1  ;;  %p1652_p3 = scmp.ne.s32.totalorder %s1961_s30, 0 }
  0x37   : > { %s2438_s26 = smov (!%p678_p4, %s677_s26), 1  ;;  %s2145_s24 = sshll.u32 %s2436_s3, 3 }
  0x38   : > { %s1710_s25 = sshll.u32 %s2436_s3, 4  ;;  %s1645_s27 = sshll.u32 %s2438_s26, 3 }
  0x39   : > { %s688_s2 = scalar_lea.vmem %s2408_s23, %s2145_s24  ;;  %s700_s11 = scalar_lea.vmem %s2378_s18, %s2145_s24 }
  0x3a   : > { %s2154_s22 = scalar_lea.vmem %s2409_s1, %s1645_s27  ;;  %s2167_s26 = scalar_lea.vmem %s2379_s19, %s1710_s25 }
  0x3b   : > { %s694_s16 = scalar_lea.vmem %s2410_s15, %s2145_s24  ;;  %714 = sbr.rel (%p1652_p3) target bundleno = 1664 (0x680), region = 100 }
  0x3c   : > { %p1653_p5 = scmp.ne.s32.totalorder (!%p1652_p3), %s1957_s0, 0 }
  0x42   : > { %718 = sbr.rel (%p1653_p5) target bundleno = 73 (0x49), region = 104  ;;  %vm719_vm0 = vcmask (!%p1653_p5), 253952   ;;  %v1976_v0 = vmov (!%p1653_p5), 0.0  }
  0x43   : > { %720 = vst.msk [vmem:[#allocation3] sm:$0x1] (!%p1653_p5), %vm719_vm0, %v1976_v0  ;;  %721 = vst.msk [vmem:[#allocation4] sm:$0x1] (!%p1653_p5), %vm719_vm0, %v1976_v0 }
  0x49 PF: > { %s2411_s12 = sld [smem:[#allocation16_spill]]  ;;  %v1977_v2 = vmov 0.0   ;;  %vm1978_vm1 = vmmov 0   ;;  %v722_v10 = vld [vmem:[%s2154_s22] sm:$0xff]  ;;  %v1891_v13 = vld [vmem:[%s2365_s5 + $0x8] sm:$0xff]   ;;  %vm860_vm2 = vcmask 261120  }
  0x4a   : > { %1741 = vmatprep.subr.bf16.mxu0 %v1977_v2  ;;  %1761 = vmatprep.subr.bf16.mxu1 %v1977_v2  ;;  %v739_v11 = vpack.c.bf16 %v722_v10, %v722_v10  ;;  %v1890_v12 = vld [vmem:[%s2365_s5] sm:$0xff]   ;;  %v1893_v23 = vld [vmem:[%s2367_s7 + $0x8] sm:$0xff]   ;;  %v1894_v31 = vld [vmem:[%s2367_s7 + $0x10] sm:$0xff]   ;;  %s2412_s10 = sld [smem:[#allocation17_spill]]  ;;  %s2413_s20 = sld [smem:[#allocation18_spill]]  ;;  %vm1261_vm3 = vcmask 253952  }
  0x4b   : > { %1757 = vmatprep.mubr.msk.bf16.mxu0 %vm1978_vm1, %v1977_v2  ;;  %1765 = vmatprep.mubr.msk.bf16.mxu1 %vm1978_vm1, %v1977_v2  ;;  %v1654_v14 = vld [vmem:[%s2364_s4] ss:$0 sm:$0xff]  ;;  %v1895_v33 = vld [vmem:[%s2367_s7 + $0x18] sm:$0xff]   ;;  %v1897_v43 = vld [vmem:[%s2369_s9 + $0x8] sm:$0xff]   ;;  %s2415_s29 = sld [smem:[#allocation19_spill]]  ;;  %s2416_s3 = sshll.u32 %s1957_s0, 3 }
  0x4c   : > { %1762 = vmatpush3.bf16.msra.mxu1 %v1890_v12  ;;  %v1892_v21 = vld [vmem:[%s2367_s7] sm:$0xff]   ;;  %v1898_v44 = vld [vmem:[%s2369_s9 + $0x10] sm:$0xff]   ;;  %v1899_v54 = vld [vmem:[%s2369_s9 + $0x18] sm:$0xff]   ;;  %s1250_s13 = scalar_lea.vmem [#allocation2], %s2416_s3 }
  0x4d   : > { %1763 = vmatprep.subr.bf16.mxu1 %v1977_v2  ;;  %v1663_v24 = vld [vmem:[%s2366_s6] ss:$0 sm:$0xff]  ;;  %v1676_v45 = vld [vmem:[%s2368_s8 + $0x1] ss:$0 sm:$0xff] }
  0x4e   : > { %v1667_v34 = vld [vmem:[%s2368_s8] ss:$0 sm:$0xff] }
  0x4f   : > { %v1882_v1 = vld [vmem:[%s2411_s12] sm:$0xff]   ;;  %v1883_v3 = vld [vmem:[%s2411_s12 + $0x8] sm:$0xff]   ;;  %v1884_v4 = vld [vmem:[%s2411_s12 + $0x10] sm:$0xff]  }
  0x50   : > { %1742 = vmatpush3.bf16.msra.mxu0 %v1882_v1  ;;  %v1885_v5 = vld [vmem:[%s2411_s12 + $0x18] sm:$0xff]   ;;  %v1886_v6 = vld [vmem:[%s2411_s12 + $0x20] sm:$0xff]   ;;  %v1887_v7 = vld [vmem:[%s2411_s12 + $0x28] sm:$0xff]   ;;  %1764 = vmatpush3.bf16.msra.mxu1 %v1891_v13  ;;  %s2414_s22 = smov %s2413_s20 }
  0x51   : > { %1743 = vmatprep.subr.bf16.mxu0 %v1977_v2  ;;  %v1888_v8 = vld [vmem:[%s2411_s12 + $0x30] sm:$0xff]   ;;  %v1889_v9 = vld [vmem:[%s2411_s12 + $0x38] sm:$0xff]   ;;  %1769 = vmatprep.subr.bf16.mxu1 %v1977_v2  ;;  %v1896_v42 = vld [vmem:[%s2369_s9] sm:$0xff]  }
  0x52   : > { %v1680_v55 = vld [vmem:[%s2412_s10] ss:$0 sm:$0xff]  ;;  %v1901_v0 = vld [vmem:[%s2414_s22 + $0x8] sm:$0xff]   ;;  %v1689_v1 = vld [vmem:[%s2412_s10 + $0x1] ss:$0 sm:$0xff] }
  0x53   : > { %v1900_v63 = vld [vmem:[%s2413_s20] sm:$0xff]  }
  0x54   : > { %1744 = vmatpush3.bf16.msra.mxu0 %v1883_v3 }
  0x55   : > { %1745 = vmatprep.subr.bf16.mxu0 %v1977_v2 }
  0x58   : > { %1746 = vmatpush3.bf16.msra.mxu0 %v1884_v4 }
  0x59   : > { %1747 = vmatprep.subr.bf16.mxu0 %v1977_v2 }
  0x5c   : > { %1748 = vmatpush3.bf16.msra.mxu0 %v1885_v5 }
  0x5d   : > { %1749 = vmatprep.subr.bf16.mxu0 %v1977_v2 }
  0x60   : > { %1750 = vmatpush3.bf16.msra.mxu0 %v1886_v6 }
  0x61   : > { %1751 = vmatprep.subr.bf16.mxu0 %v1977_v2 }
  0x64   : > { %1752 = vmatpush3.bf16.msra.mxu0 %v1887_v7 }
  0x65   : > { %1753 = vmatprep.subr.bf16.mxu0 %v1977_v2 }
  0x68   : > { %1754 = vmatpush3.bf16.msra.mxu0 %v1888_v8 }
  0x69   : > { %1755 = vmatprep.subr.bf16.mxu0 %v1977_v2 }
  0x6c   : > { %1756 = vmatpush3.bf16.msra.mxu0 %v1889_v9 }
  0x6d   : > { %1793 = vmatprep.subr.bf16.mxu0 %v1977_v2 }
  0x6f   : > { %1758 = vmatmul.mubr.bf16.vlgmr.msra.gmra.mrb[0].mxu0 %v739_v11 }
  0x70   : > { %1797 = vmatprep.mubr.msk.bf16.mxu0 %vm1978_vm1, %v1977_v2  ;;  %1794 = vmatpush3.bf16.msra.mxu0 %v1898_v44 }
  0x71   : > { %1795 = vmatprep.subr.bf16.mxu0 %v1977_v2 }
  0x74   : > { %1796 = vmatpush3.bf16.msra.mxu0 %v1899_v54 }
 0x142   : > { %v829_v15 = vpop.f32.mrb[0].mxu0 }
 0x143   : > { %v830_v16 = vadd.f32 %v1654_v14, %v829_v15  ;;  %v1759_v17 = vpop.f32.mrb[1].mxu0 }
 0x144   : > { %v832_v18 = vpop.f32.mrb[2].mxu0 }
 0x145   : > { %1902 = vtanh.f32 %v830_v16  ;;  %v1760_v19 = vpop.f32.mrb[3].mxu0 }
 0x14f   : > { %v1903_v20 = vpop.eup %1902 }
 0x150   : > { %v840_v22 = vpack.c.bf16 %v1903_v20, %v1903_v20 }
 0x152   : > { %1766 = vmatmul.mubr.msk.bf16.vlgmr.msra.gmra.mrb[0].mxu1 %vm860_vm2, %v840_v22 }
 0x153   : > { %1770 = vmatpush3.bf16.msra.mxu1 %v1892_v21  ;;  %1773 = vmatprep.mubr.msk.bf16.mxu1 %vm1978_vm1, %v1977_v2 }
 0x154   : > { %1771 = vmatprep.subr.bf16.mxu1 %v1977_v2 }
 0x157   : > { %1772 = vmatpush3.bf16.msra.mxu1 %v1893_v23 }
 0x158   : > { %1777 = vmatprep.subr.bf16.mxu1 %v1977_v2 }
 0x225   : > { %v898_v25 = vpop.f32.mrb[0].mxu1 }
 0x226   : > { %v899_v26 = vadd.f32 %v1663_v24, %v898_v25  ;;  %v1767_v27 = vpop.f32.mrb[1].mxu1 }
 0x227   : > { %v901_v28 = vpop.f32.mrb[2].mxu1 }
 0x228   : > { %v904_v29 = vmax.f32 %v899_v26, 0.0  ;;  %v1768_v30 = vpop.f32.mrb[3].mxu1  ;;  %v1252_v28 = vld [vmem:[#allocation3] sm:$0x1] }
 0x22a   : > { %v909_v32 = vpack.c.bf16 %v904_v29, %v904_v29 }
 0x22c   : > { %1774 = vmatmul.mubr.msk.bf16.vlgmr.msra.gmra.mrb[4].mxu1 %vm860_vm2, %v909_v32 }
 0x22d   : > { %1778 = vmatpush3.bf16.msra.mxu1 %v1894_v31  ;;  %1781 = vmatprep.mubr.msk.bf16.mxu1 %vm1978_vm1, %v1977_v2  ;;  %v1263_v31 = vld [vmem:[#allocation4] sm:$0x1] }
 0x22e   : > { %1779 = vmatprep.subr.bf16.mxu1 %v1977_v2 }
 0x231   : > { %1780 = vmatpush3.bf16.msra.mxu1 %v1895_v33 }
 0x232   : > { %1785 = vmatprep.subr.bf16.mxu1 %v1977_v2 }
 0x2ff   : > { %v966_v35 = vpop.f32.mrb[4].mxu1 }
 0x300   : > { %v967_v36 = vadd.f32 %v1667_v34, %v966_v35  ;;  %v1775_v37 = vpop.f32.mrb[5].mxu1 }
 0x301   : > { %v969_v38 = vpop.f32.mrb[6].mxu1 }
 0x302   : > { %v972_v39 = vmax.f32 %v967_v36, 0.0  ;;  %v1776_v40 = vpop.f32.mrb[7].mxu1 }
 0x304   : > { %v978_v41 = vpack.c.bf16 %v972_v39, %v972_v39 }
 0x306   : > { %1782 = vmatmul.mubr.msk.bf16.vlgmr.msra.gmra.mrb[8].mxu1 %vm860_vm2, %v978_v41 }
 0x307   : > { %1789 = vmatprep.mubr.msk.bf16.mxu1 %vm1978_vm1, %v1977_v2  ;;  %1786 = vmatpush3.bf16.msra.mxu1 %v1896_v42 }
 0x308   : > { %1787 = vmatprep.subr.bf16.mxu1 %v1977_v2 }
 0x30b   : > { %1788 = vmatpush3.bf16.msra.mxu1 %v1897_v43 }
 0x30c   : > { %1801 = vmatprep.subr.bf16.mxu1 %v1977_v2 }
 0x3d9   : > { %v1036_v46 = vpop.f32.mrb[8].mxu1 }
 0x3da   : > { %v1037_v47 = vadd.f32 %v1676_v45, %v1036_v46  ;;  %v1783_v48 = vpop.f32.mrb[9].mxu1 }
 0x3db   : > { %v1039_v49 = vpop.f32.mrb[10].mxu1 }
 0x3dc   : > { %v1042_v50 = vadd.f32 %v1037_v47, %v904_v29  ;;  %v1784_v51 = vpop.f32.mrb[11].mxu1 }
 0x3de   : > { %v1043_v52 = vmax.f32 %v1042_v50, 0.0 }
 0x3e0   : > { %v1048_v53 = vpack.c.bf16 %v1043_v52, %v1043_v52 }
 0x3e2   : > { %1790 = vmatmul.mubr.msk.bf16.vlgmr.msra.gmra.mrb[12].mxu1 %vm860_vm2, %v1048_v53 }
 0x3e3   : > { %1805 = vmatprep.mubr.msk.bf16.mxu1 %vm1978_vm1, %v1977_v2  ;;  %1802 = vmatpush3.bf16.msra.mxu1 %v1900_v63 }
 0x3e4   : > { %1803 = vmatprep.subr.bf16.mxu1 %v1977_v2  ;;  %v1693_v2 = vld [vmem:[%s2415_s29] ss:$0 sm:$0xff] }
 0x3e7   : > { %1804 = vmatpush3.bf16.msra.mxu1 %v1901_v0 }
 0x4b5   : > { %v1105_v56 = vpop.f32.mrb[12].mxu1 }
 0x4b6   : > { %v1106_v57 = vadd.f32 %v1680_v55, %v1105_v56  ;;  %v1791_v58 = vpop.f32.mrb[13].mxu1 }
 0x4b7   : > { %v1108_v59 = vpop.f32.mrb[14].mxu1 }
 0x4b8   : > { %v1111_v60 = vmax.f32 %v1106_v57, 0.0  ;;  %v1792_v61 = vpop.f32.mrb[15].mxu1 }
 0x4ba   : > { %v1117_v62 = vpack.c.bf16 %v1111_v60, %v1111_v60 }
 0x4bc   : > { %1798 = vmatmul.mubr.msk.bf16.vlgmr.msra.gmra.mrb[4].mxu0 %vm860_vm2, %v1117_v62 }
 0x58f   : > { %v1175_v3 = vpop.f32.mrb[4].mxu0 }
 0x590   : > { %v1176_v4 = vadd.f32 %v1689_v1, %v1175_v3  ;;  %v1799_v5 = vpop.f32.mrb[5].mxu0 }
 0x591   : > { %v1178_v6 = vpop.f32.mrb[6].mxu0 }
 0x592   : > { %v1181_v7 = vadd.f32 %v1176_v4, %v1043_v52  ;;  %v1800_v8 = vpop.f32.mrb[7].mxu0 }
 0x594   : > { %v1182_v9 = vmax.f32 %v1181_v7, 0.0 }
 0x596   : > { %v1187_v10 = vpack.c.bf16 %v1182_v9, %v1182_v9 }
 0x598   : > { %1806 = vmatmul.mubr.msk.bf16.vlgmr.msra.gmra.mrb[16].mxu1 %vm860_vm2, %v1187_v10 }
 0x66b   : > { %v1244_v11 = vpop.f32.mrb[16].mxu1 }
 0x66c   : > { %v1245_v12 = vadd.f32 %v1693_v2, %v1244_v11  ;;  %v1807_v13 = vpop.f32.mrb[17].mxu1 }
 0x66d   : > { %v1247_v14 = vpop.f32.mrb[18].mxu1 }
 0x66e   : > { %1251 = vst.msk [vmem:[%s1250_s13] sm:$0xff] %vm860_vm2, %v1245_v12  ;;  %v1253_v15 = vsel %vm860_vm2, %v1245_v12, 0.0  ;;  %v1264_v16 = vmul.f32 %v1245_v12, %v1245_v12  ;;  %v1808_v17 = vpop.f32.mrb[19].mxu1 }
 0x66f   : > { %v1254_v18 = vrot.slane %v1253_v15, 4 }
 0x670   : > { %v1265_v19 = vsel %vm860_vm2, %v1264_v16, 0.0 }
 0x671   : > { %v1255_v20 = vadd.f32 %v1254_v18, %v1253_v15  ;;  %v1266_v21 = vrot.slane %v1265_v19, 4 }
 0x673   : > { %v1256_v22 = vrot.slane %v1255_v20, 2  ;;  %v1267_v23 = vadd.f32 %v1266_v21, %v1265_v19 }
 0x675   : > { %v1257_v24 = vadd.f32 %v1256_v22, %v1255_v20  ;;  %v1268_v25 = vrot.slane %v1267_v23, 2 }
 0x677   : > { %v1258_v26 = vrot.slane %v1257_v24, 1  ;;  %v1269_v27 = vadd.f32 %v1268_v25, %v1267_v23 }
 0x679   : > { %v1259_v29 = vadd.f32 %v1258_v26, %v1257_v24  ;;  %v1270_v30 = vrot.slane %v1269_v27, 1 }
 0x67b   : > { %v1260_v32 = vadd.f32 %v1259_v29, %v1252_v28  ;;  %v1271_v33 = vadd.f32 %v1270_v30, %v1269_v27 }
 0x67d   : > { %1262 = vst.msk [vmem:[#allocation3] sm:$0x1] %vm1261_vm3, %v1260_v32  ;;  %v1272_v34 = vadd.f32 %v1271_v33, %v1263_v31 }
 0x67f   : > { %1273 = vst.msk [vmem:[#allocation4] sm:$0x1] %vm1261_vm3, %v1272_v34 }
 0x680 PF: > { %p1697_p6 = scmp.ne.s32.totalorder %s1961_s30, 1 }
 0x681   : > { %vm1279_vm4 = vcmask (!%p1697_p6), 253952   ;;  %v1325_v39 = vld [vmem:[%s694_s16] sm:$0xff] (!%p1697_p6)  ;;  %s1979_s20 = smov (!%p1697_p6), 16   ;;  %s2419_s28 = sld [smem:[#allocation21_spill]] (!%p1697_p6)  ;;  %v1980_v56 = vmov (!%p1697_p6), 0.0   ;;  %vm1320_vm5 = vcmask (!%p1697_p6), 261120   ;;  %v1418_v26 = vlaneseq (!%p1697_p6) }
 0x682   : > { %1277 = sbr.rel (%p1697_p6) target bundleno = 2524 (0x9dc), region = 108  ;;  %1327 = vrot.lane.b32.xlu1 (!%p1697_p6), %v1325_v39, %s1979_s20  ;;  %v1336_v54 = vld [vmem:[%s688_s2] sm:$0xff] (!%p1697_p6)  ;;  %1809 = vmatprep.subr.bf16.mxu0 (!%p1697_p6), %v1980_v56  ;;  %s1309_s2 = sld [smem:[#allocation5]] (!%p1697_p6)  ;;  %vm1981_vm6 = vmmov (!%p1697_p6), 0   ;;  %vm1341_vm7 = vcmask (!%p1697_p6), 130048   ;;  %v1983_v17 = vmov (!%p1697_p6), 0  }
 0x683   : > { %s1698_s17 = sld [smem:[#allocation5 + $0x1]] (!%p1697_p6)  ;;  %1813 = vmatprep.mubr.msk.bf16.mxu0 (!%p1697_p6), %vm1981_vm6, %v1980_v56  ;;  %1483 = vmatprep.mubr.bf16.mxu1 (!%p1697_p6), %v1983_v17  ;;  %v1419_v27 = vshrl.u32 (!%p1697_p6), %v1418_v26, 7  ;;  %s2423_s23 = sld [smem:[#allocation24_spill]] (!%p1697_p6) }
 0x684   : > { %v1278_v35 = vld [vmem:[#allocation3] sm:$0x1] (!%p1697_p6) }
 0x685   : > { %v1280_v37 = vsel (!%p1697_p6), %vm1279_vm4, %v1278_v35, 0.0  ;;  %v1420_v28 = vsub.s32 (!%p1697_p6), 0, %v1419_v27  ;;  %v1424_v30 = vsub.s32 (!%p1697_p6), 1, %v1419_v27 }
 0x686   : > { %v1291_v36 = vld [vmem:[#allocation4] sm:$0x1] (!%p1697_p6)  ;;  %1281 = vadd.xlane.f32.xlu0 (!%p1697_p6), %v1280_v37 }
 0x687   : > { %v1292_v38 = vsel (!%p1697_p6), %vm1279_vm4, %v1291_v36, 0.0  ;;  %v1904_v55 = vld [vmem:[%s2419_s28] sm:$0xff] (!%p1697_p6)   ;;  %v1905_v5 = vld [vmem:[%s2419_s28 + $0x8] sm:$0xff] (!%p1697_p6)  }
 0x688   : > { %1810 = vmatpush3.bf16.msra.mxu0 (!%p1697_p6), %v1904_v55 }
 0x689   : > { %1811 = vmatprep.subr.bf16.mxu0 %v1980_v56  ;;  %v1318_v63 = vstv %s1698_s17  ;;  %v1416_v29 = vld [vmem:[%s2423_s23] sm:$0x3] }
 0x68a   : > { %1293 = vadd.xlane.f32.xlu0 %v1292_v38  ;;  %v1421_v31 = vrot.slane %v1416_v29, %v1420_v28  ;;  %v1425_v32 = vrot.slane %v1416_v29, %v1424_v30 }
 0x68c   : > { %1812 = vmatpush3.bf16.msra.mxu0 %v1905_v5 }
 0x6a0   : > { %1338 = vrot.lane.b32.xlu0 %v1336_v54, %s1979_s20  ;;  %s2420_s20 = sshll.u32 %s1957_s0, 3 }
 0x6a1   : > { %s1311_s16 = scalar_lea.vmem [#allocation2], %s2420_s20 }
 0x6a2   : > { %v1312_v59 = vld [vmem:[%s1311_s16] sm:$0xff] }
 0x6f4   : > { %v1328_v7 = vpop.permute.xlu1 %1327 }
 0x713   : > { %v1282_v40 = vpop.xlane.xlu0 %1281 }
 0x714   : > { %v1283_v41 = vrot.slane %v1282_v40, 4 }
 0x716   : > { %v1284_v42 = vadd.f32 %v1283_v41, %v1282_v40 }
 0x717   : > { %v1294_v43 = vpop.xlane.xlu0 %1293 }
 0x718   : > { %v1285_v44 = vrot.slane %v1284_v42, 2  ;;  %v1295_v45 = vrot.slane %v1294_v43, 4 }
 0x71a   : > { %v1296_v46 = vadd.f32 %v1295_v45, %v1294_v43  ;;  %v1286_v47 = vadd.f32 %v1285_v44, %v1284_v42 }
 0x71b   : > { %v1339_v2 = vpop.permute.xlu0 %1338 }
 0x71c   : > { %v1297_v48 = vrot.slane %v1296_v46, 2  ;;  %v1287_v49 = vrot.slane %v1286_v47, 1 }
 0x71e   : > { %v1288_v50 = vadd.f32 %v1287_v49, %v1286_v47  ;;  %v1298_v51 = vadd.f32 %v1297_v48, %v1296_v46 }
 0x720   : > { %1817 = vpush %v1288_v50  ;;  %v1299_v52 = vrot.slane %v1298_v51, 1 }
 0x722   : > { %v1300_v53 = vadd.f32 %v1299_v52, %v1298_v51 }
 0x724   : > { %1819 = vpush %v1300_v53 }
 0x751   : > { %s1818_s25 = spop %1817 }
 0x752   : > { %s1290_s27 = smul.f32 0.001953125, %s1818_s25 }
 0x754   : > { %s1303_s29 = smul.f32 %s1290_s27, %s1290_s27  ;;  %v1313_v60 = vstv %s1290_s27 }
 0x755   : > { %s1820_s3 = spop %1819  ;;  %v1314_v61 = vsub.f32 %v1312_v59, %v1313_v60 }
 0x756   : > { %s1302_s13 = smul.f32 0.001953125, %s1820_s3  ;;  %s2421_s3 = sld [smem:[#allocation23_spill]] }
 0x758   : > { %s1304_s15 = ssub.f32 %s1302_s13, %s1303_s29  ;;  %s1982_s13 = smov 112  }
 0x75a   : > { %s1305_s14 = sadd.f32 0.001, %s1304_s15 }
 0x75c   : > { %v1306_v57 = vstv %s1305_s14  ;;  %v1906_v6 = vld [vmem:[%s2421_s3 + $0x4] ss:$8 sps:$4 sm:$0xff]   ;;  %v1908_v14 = vld [vmem:[%s2421_s3] ss:$8 sps:$4 sm:$0xff]   ;;  %v1909_v15 = vld [vmem:[%s2421_s3 + $0x14] ss:$8 sps:$4 sm:$0xff]  }
 0x75d   : > { %1912 = vrsqrt.f32 %v1306_v57  ;;  %1451 = vmatprep.subr.bf16.mxu1 %v1906_v6  ;;  %v1911_v16 = vld [vmem:[%s2421_s3 + $0x10] ss:$8 sps:$4 sm:$0xff]  }
 0x75e   : > { %1452 = vmatpush1.bf16.msra.mxu1 %v1908_v14 }
 0x75f   : > { %1453 = vmatprep.subr.bf16.mxu1 %v1909_v15 }
 0x762   : > { %1454 = vmatpush1.bf16.msra.mxu1 %v1911_v16 }
 0x767   : > { %v1913_v58 = vpop.eup %1912 }
 0x768   : > { %1821 = vpush %v1913_v58 }
 0x799   : > { %s1822_s30 = spop %1821 }
 0x79a   : > { %s1315_s21 = smul.f32 %s1822_s30, %s1309_s2  ;;  %s2422_s30 = sld [smem:[#allocation22_spill]] }
 0x79c   : > { %v1316_v62 = vstv %s1315_s21 }
 0x79d   : > { %v1317_v0 = vmul.f32 %v1316_v62, %v1314_v61 }
 0x79f   : > { %v1319_v1 = vadd.f32 %v1318_v63, %v1317_v0 }
 0x7a0   : > { %v1699_v18 = vld [vmem:[%s2422_s30] ss:$0 sm:$0xff] }
 0x7a1   : > { %v1322_v3 = vmul.f32 0.5, %v1319_v1  ;;  %1321 = vst.msk [vmem:[%s700_s11] sm:$0xff] %vm1320_vm5, %v1319_v1 }
 0x7a3   : > { %v1323_v4 = vmul.f32 1.442695, %v1322_v3 }
 0x7a5   : > { %1914 = vpow2.f32 %v1323_v4 }
 0x7af   : > { %v1915_v8 = vpop.eup %1914 }
 0x7b0   : > { %v1330_v9 = vmul.f32 %v1915_v8, %v1328_v7 }
 0x7b2   : > { %1332 = vrot.lane.b32.xlu1 %v1330_v9, %s1982_s13 }
 0x824   : > { %v1333_v10 = vpop.permute.xlu1 %1332 }
 0x825   : > { %v1335_v11 = vadd.f32 %v1333_v10, %v1319_v1 }
 0x827   : > { %v1342_v12 = vsel %vm1341_vm7, %v1335_v11, %v1339_v2 }
 0x828   : > { %v1347_v13 = vpack.c.bf16 %v1342_v12, %v1342_v12 }
 0x82a   : > { %1814 = vmatmul.mubr.msk.bf16.vlgmr.msra.gmra.mrb[0].mxu0 %vm1320_vm5, %v1347_v13 }
 0x8fd   : > { %v1404_v19 = vpop.f32.mrb[0].mxu0 }
 0x8fe   : > { %v1405_v20 = vadd.f32 %v1699_v18, %v1404_v19  ;;  %v1815_v21 = vpop.f32.mrb[1].mxu0 }
 0x8ff   : > { %v1407_v22 = vpop.f32.mrb[2].mxu0 }
 0x900   : > { %v1410_v23 = vmax.f32 %v1405_v20, 0.0  ;;  %v1816_v24 = vpop.f32.mrb[3].mxu0 }
 0x902   : > { %v1415_v25 = vpack.c.bf16 %v1410_v23, %v1410_v23 }
 0x904   : > { %1707 = vmatmul.mubr.msk.bf16.vlgmr.msra.gmra.mrb[0].mxu1 %vm1320_vm5, %v1415_v25 }
 0x9d7   : > { %v1485_v33 = vpop.f32.mrb[0].mxu1 }
 0x9d8   : > { %v1486_v34 = vadd.f32 %v1485_v33, %v1421_v31  ;;  %v1487_v35 = vpop.f32.mrb[1].mxu1 }
 0x9d9   : > { %v1488_v36 = vadd.f32 %v1487_v35, %v1425_v32  ;;  %v1489_v37 = vpop.f32.mrb[2].mxu1 }
 0x9da   : > { %1492 = vst [vmem:[%s2167_s26] sm:$0xff] %v1486_v34  ;;  %v1490_v38 = vpop.f32.mrb[3].mxu1 }
 0x9db   : > { %1493 = vst [vmem:[%s2167_s26 + $0x8] sm:$0xff] %v1488_v36 }
 0x9dc PF: > { %s2424_s0 = sld [smem:[#allocation10_spill]]  ;;  %s2426_s30 = sld [smem:[#allocation9_spill]] }
 0x9dd   : > { %s2427_s20 = sld [smem:[#allocation11_spill]]  ;;  %s2428_s21 = sld [smem:[#allocation12_spill]] }
 0x9e2   : > { %s31_s1 = sadd.s32 1, %s2424_s0   ;;  %s2425_s0 = sld [smem:[#allocation8_spill]] }
 0x9e3   : > { %p28_p7 = scmp.ge.s32.totalorder %s31_s1, 6  }
 0x9e5   :  { %30 = sbr.rel (!%p28_p7) target bundleno = 16 (0x10), region = 163 }
 0x9ec   :  { %1535 = vsyncpa [#allocation6], 1 }
 0x9ed   :  { %1537 = vsyncpa [#allocation6 + $0x1], 1 }

</bundles_post_ra>
